<compile_context>
chip_gen: v7x
topology: tpu7x:2x2x1
jax: 0.10.0
libtpu: 0.0.40
codegen_flags: <defaults>
</compile_context>

<pallas_src>
import functools

import jax
import jax.numpy as jnp
import numpy as np
from jax.experimental import pallas as pl
from jax.experimental.pallas import tpu as pltpu


def residual_block_kernel(xs_ref, w_ref, o_ref, *, img_w):
    """One batch block of B_BLK instances.

    xs_ref: (B_BLK, 3*Cin, (H+2)*W) bf16 -- reflect-padded image; the 3 kx-shifted
            copies are stacked on the channel axis (row = kx*Cin + ci).
    w_ref : (3, 2*Cout, 3*Cin) bf16 -- per-ky tap-group weights,
            w_ref[ky][co, kx*Cin+ci]; rows [0,Cout) = conv branch, [Cout,2Cout) = skip.
    o_ref : (B_BLK, Cout, H*W) -- fused output, H*W on the lane axis (lane-dense).
    """
    b_blk, cout, hw = o_ref.shape

    def lrelu(t):
        return jnp.where(t >= 0.0, t, 0.2 * t)

    # Static unroll over the instances in this block: they share the resident weight
    # block and each instance's working set stays small.
    for b in range(b_blk):
        # Both convolutions as ONE merged GEMM chain: 3 tap-group dots (bf16 operands,
        # f32 accumulation). Each ky shift is a contiguous static lane slice of the
        # padded image block; the accumulator is seeded by the first dot.
        # NOTE: ky*img_w is generally not a multiple of 128, so narrow images pay a
        # lane relayout before each dot; free when W % 128 == 0.
        y = jnp.dot(w_ref[0], xs_ref[b, :, 0:hw],
                    preferred_element_type=jnp.float32)
        for ky in (1, 2):
            y = y + jnp.dot(w_ref[ky], xs_ref[b, :, ky * img_w:ky * img_w + hw],
                            preferred_element_type=jnp.float32)

        # Instance norm for BOTH branches at once (each channel row over its H*W
        # pixels, biased variance, eps=1e-5), kept as values -- no scratch round-trip.
        m = jnp.mean(y, axis=1, keepdims=True)
        d = y - m                                   # shared by variance and normalize
        v = jnp.mean(d * d, axis=1, keepdims=True)
        yn = d * jax.lax.rsqrt(v + 1e-5)

        c = lrelu(yn[:cout, :])                     # Conv2D branch
        o_ref[b] = lrelu(yn[cout:, :] + c).astype(o_ref.dtype)


def _pick_batch_block(n, per_instance_bytes, block_budget_bytes):
    """Largest divisor of n (capped at 8) whose blocks fit the budget; keep the grid at
    >= 2 steps when n >= 2 so v7x's second TensorCore is not idle."""
    max_b = max(1, block_budget_bytes // max(per_instance_bytes, 1))
    max_b = min(int(max_b), 8)
    if n >= 2:
        max_b = min(max_b, n // 2)
    max_b = max(max_b, 1)
    best = 1
    for cand in range(1, max_b + 1):
        if n % cand == 0:
            best = cand
    return best


def residual_block_forward(x_nchw, w1, w2, *, out_dtype=jnp.float32):
    """x_nchw: (N, Cin, H, W); w1: (Cout, Cin, 3, 3); w2: (Cout, Cout, 3, 3).

    out_dtype=jnp.bfloat16 halves the HBM writeback (useful on v5e); the default f32
    matches the PyTorch reference.
    """
    N, Cin, H, W = x_nchw.shape
    Cout = w1.shape[0]
    if Cin != Cout:
        raise ValueError("ResidualBlock only type-checks with in_channels == out_channels")
    Hp = H + 2
    HW = H * W

    # ---- light glue (pure JAX): reflect pad + 3 kx-shifted channel-stacked copies.
    # (reflect padding needs H, W >= 2, same as the PyTorch module.)  Note the conv
    # inputs themselves are bf16: systematic ~0.4% loss vs. the f32 PyTorch reference.
    xpad = jnp.pad(x_nchw, ((0, 0), (0, 0), (1, 1), (1, 1)), mode="reflect")   # (N,Cin,H+2,W+2)
    xs = jnp.concatenate([xpad[:, :, :, kx:kx + W] for kx in range(3)], axis=1)  # (N,3Cin,H+2,W)
    xs = xs.reshape(N, 3 * Cin, Hp * W).astype(jnp.bfloat16)

    # Merged weights grouped per ky: wk[ky][co, kx*Cin+ci] == concat(w1, w2)[co, ci, ky, kx]
    wcat = jnp.concatenate([w1, w2], axis=0)                             # (2*Cout, Cin, 3, 3)
    wk = jnp.transpose(wcat, (2, 0, 3, 1)).reshape(3, 2 * Cout, 3 * Cin).astype(jnp.bfloat16)

    # ---- VMEM budget: actual block bytes + headroom, per-generation ceiling.
    out_bytes = jnp.dtype(out_dtype).itemsize
    xs_blk = 3 * Cin * Hp * W * 2                 # bf16 input block, per instance
    out_blk = Cout * HW * out_bytes               # output block, per instance
    work = 2 * (2 * Cout * HW * 4)                # f32 y / yn working values, per instance
    w_blk = 3 * 2 * Cout * 3 * Cin * 2            # weight block (constant index_map; still
                                                  # double-buffered; Buffered(1) would save
                                                  # one copy but is negligible at these sizes)
    try:
        vmem_cap = int(pltpu.get_tpu_info().vmem_capacity_bytes)
    except Exception:
        vmem_cap = 64 * 1024 * 1024               # v7x-safe fallback
    vmem_ceiling = (vmem_cap * 3) // 4            # leave room for internal scratch

    b_blk = _pick_batch_block(N, xs_blk + out_blk + work, vmem_ceiling // 4)
    need = 2 * b_blk * (xs_blk + out_blk) + 2 * w_blk + b_blk * work
    if need > vmem_ceiling:
        # TODO(synk): HW-tile grid axis + two-pass instance norm for very large images.
        raise ValueError(
            f"per-step VMEM need {need} B exceeds usable VMEM {vmem_ceiling} B; "
            "image too large for the whole-instance-block path")
    vmem_limit = int(min(max(need + need // 4, 32 * 1024 * 1024), vmem_ceiling))

    kernel = functools.partial(residual_block_kernel, img_w=W)

    out = pl.pallas_call(
        kernel,
        out_shape=jax.ShapeDtypeStruct((N, Cout, HW), out_dtype),
        grid_spec=pltpu.PrefetchScalarGridSpec(
            num_scalar_prefetch=0,
            grid=(N // b_blk,),
            in_specs=[
                pl.BlockSpec((b_blk, 3 * Cin, Hp * W), lambda n: (n, 0, 0)),
                pl.BlockSpec((3, 2 * Cout, 3 * Cin), lambda n: (0, 0, 0)),
            ],
            out_specs=pl.BlockSpec((b_blk, Cout, HW), lambda n: (n, 0, 0)),
        ),
        compiler_params=pltpu.CompilerParams(
            dimension_semantics=("parallel",),
            vmem_limit_bytes=vmem_limit,
        ),
    )(xs, wk)

    return out.reshape(N, Cout, H, W)   # already channel-major -> NCHW; no transpose needed


def ref_forward(x, w1, w2):
    """Pure-JAX f32 reference matching the PyTorch module."""
    def conv(x, w):
        xp = jnp.pad(x, ((0, 0), (0, 0), (1, 1), (1, 1)), mode="reflect")
        return jax.lax.conv_general_dilated(
            xp, w, window_strides=(1, 1), padding="VALID",
            dimension_numbers=("NCHW", "OIHW", "NCHW"),
            precision=jax.lax.Precision.HIGHEST)

    def inorm(y):
        m = y.mean(axis=(2, 3), keepdims=True)
        v = ((y - m) ** 2).mean(axis=(2, 3), keepdims=True)
        return (y - m) * jax.lax.rsqrt(v + 1e-5)

    lrelu = lambda y: jnp.where(y >= 0, y, 0.2 * y)
    c = lrelu(inorm(conv(x, w1)))
    return lrelu(inorm(conv(x, w2)) + c)


if __name__ == "__main__":
    key = jax.random.PRNGKey(0)
    k1, k2, k3 = jax.random.split(key, 3)

    # in_channels == out_channels (required by the module's own forward)
    N, C, H, W = 2, 4, 16, 16
    x = jax.random.normal(k1, (N, C, H, W), jnp.float32)

    # Deterministic synthetic weights (Conv2d kaiming-uniform-like bounds), bias=False.
    fan_in = C * 3 * 3
    bound = 1.0 / (fan_in ** 0.5)
    w1 = jax.random.uniform(k2, (C, C, 3, 3), jnp.float32, -bound, bound)
    w2 = jax.random.uniform(k3, (C, C, 3, 3), jnp.float32, -bound, bound)

    fwd = jax.jit(residual_block_forward)
    out = jax.block_until_ready(fwd(x, w1, w2))
    ref = jax.block_until_ready(ref_forward(x, w1, w2))

    assert out.shape == (N, C, H, W)
    # bf16 MXU operands vs. a strict f32/HIGHEST reference: expected worst-case
    # deviation ~1e-2 on the unit-variance (instance-normalized) output.
    np.testing.assert_allclose(np.asarray(out), np.asarray(ref), rtol=2e-2, atol=3e-2)
    print("KERNEL_OK")
</pallas_src>

<mosaic_0001>
module attributes {stable_mosaic.version = 11 : i64} {
  func.func @residual_block_kernel(%arg0: i32, %arg1: memref<1x12x288xbf16, #tpu.memory_space<vmem>>, %arg2: memref<3x8x12xbf16, #tpu.memory_space<vmem>>, %arg3: memref<1x4x256xf32, #tpu.memory_space<vmem>>) attributes {dimension_semantics = [#tpu.dimension_semantics<parallel>], iteration_bounds = array<i64: 2>, scalar_prefetch = 0 : i64, scratch_operands = 0 : i64, tpu.core_type = #tpu.core_type<tc>, window_params = [{transform_indices = @transform_0, window_bounds = array<i64: 1, 12, 288>}, {pipeline_mode = #tpu.pipeline_mode<synchronous>, transform_indices = @transform_1, window_bounds = array<i64: 3, 8, 12>}, {transform_indices = @transform_2, window_bounds = array<i64: 1, 4, 256>}]} {
    %c0 = arith.constant 0 : index
    %c0_0 = arith.constant 0 : index
    %c0_1 = arith.constant 0 : index
    %0 = vector.load %arg2[%c0, %c0_0, %c0_1] : memref<3x8x12xbf16, #tpu.memory_space<vmem>>, vector<1x8x12xbf16>
    %1 = vector.shape_cast %0 : vector<1x8x12xbf16> to vector<8x12xbf16>
    %c0_2 = arith.constant 0 : index
    %c0_3 = arith.constant 0 : index
    %c0_4 = arith.constant 0 : index
    %2 = vector.load %arg1[%c0_2, %c0_3, %c0_4] : memref<1x12x288xbf16, #tpu.memory_space<vmem>>, vector<1x12x256xbf16>
    %3 = vector.shape_cast %2 : vector<1x12x256xbf16> to vector<12x256xbf16>
    %cst = arith.constant dense<0.000000e+00> : vector<8x256xf32>
    %4 = tpu.matmul %1, %3, %cst {dimension_numbers = #tpu.dot_dimension_numbers<[1], [0], [0], [1], [0, 0, 1, 1], [], []>} : vector<8x12xbf16>, vector<12x256xbf16>, vector<8x256xf32> -> vector<8x256xf32>
    %c1 = arith.constant 1 : index
    %c0_5 = arith.constant 0 : index
    %c0_6 = arith.constant 0 : index
    %5 = vector.load %arg2[%c1, %c0_5, %c0_6] : memref<3x8x12xbf16, #tpu.memory_space<vmem>>, vector<1x8x12xbf16>
    %6 = vector.shape_cast %5 : vector<1x8x12xbf16> to vector<8x12xbf16>
    %c0_7 = arith.constant 0 : index
    %c0_8 = arith.constant 0 : index
    %c16 = arith.constant 16 : index
    %7 = vector.load %arg1[%c0_7, %c0_8, %c16] : memref<1x12x288xbf16, #tpu.memory_space<vmem>>, vector<1x12x256xbf16>
    %8 = vector.shape_cast %7 : vector<1x12x256xbf16> to vector<12x256xbf16>
    %cst_9 = arith.constant dense<0.000000e+00> : vector<8x256xf32>
    %9 = tpu.matmul %6, %8, %cst_9 {dimension_numbers = #tpu.dot_dimension_numbers<[1], [0], [0], [1], [0, 0, 1, 1], [], []>} : vector<8x12xbf16>, vector<12x256xbf16>, vector<8x256xf32> -> vector<8x256xf32>
    %10 = arith.addf %4, %9 : vector<8x256xf32>
    %c2 = arith.constant 2 : index
    %c0_10 = arith.constant 0 : index
    %c0_11 = arith.constant 0 : index
    %11 = vector.load %arg2[%c2, %c0_10, %c0_11] : memref<3x8x12xbf16, #tpu.memory_space<vmem>>, vector<1x8x12xbf16>
    %12 = vector.shape_cast %11 : vector<1x8x12xbf16> to vector<8x12xbf16>
    %c0_12 = arith.constant 0 : index
    %c0_13 = arith.constant 0 : index
    %c32 = arith.constant 32 : index
    %13 = vector.load %arg1[%c0_12, %c0_13, %c32] : memref<1x12x288xbf16, #tpu.memory_space<vmem>>, vector<1x12x256xbf16>
    %14 = vector.shape_cast %13 : vector<1x12x256xbf16> to vector<12x256xbf16>
    %cst_14 = arith.constant dense<0.000000e+00> : vector<8x256xf32>
    %15 = tpu.matmul %12, %14, %cst_14 {dimension_numbers = #tpu.dot_dimension_numbers<[1], [0], [0], [1], [0, 0, 1, 1], [], []>} : vector<8x12xbf16>, vector<12x256xbf16>, vector<8x256xf32> -> vector<8x256xf32>
    %16 = arith.addf %10, %15 : vector<8x256xf32>
    %cst_15 = arith.constant dense<0.000000e+00> : vector<8xf32>
    %17 = vector.multi_reduction <add>, %16, %cst_15 [1] : vector<8x256xf32> to vector<8xf32>
    %18 = vector.shape_cast %17 : vector<8xf32> to vector<8x1xf32>
    %cst_16 = arith.constant 2.560000e+02 : f32
    %19 = vector.broadcast %cst_16 : f32 to vector<8x1xf32>
    %20 = arith.divf %18, %19 : vector<8x1xf32>
    %21 = vector.broadcast %20 : vector<8x1xf32> to vector<8x256xf32>
    %22 = arith.subf %16, %21 : vector<8x256xf32>
    %23 = arith.mulf %22, %22 : vector<8x256xf32>
    %cst_17 = arith.constant dense<0.000000e+00> : vector<8xf32>
    %24 = vector.multi_reduction <add>, %23, %cst_17 [1] : vector<8x256xf32> to vector<8xf32>
    %25 = vector.shape_cast %24 : vector<8xf32> to vector<8x1xf32>
    %cst_18 = arith.constant 2.560000e+02 : f32
    %26 = vector.broadcast %cst_18 : f32 to vector<8x1xf32>
    %27 = arith.divf %25, %26 : vector<8x1xf32>
    %cst_19 = arith.constant 9.99999974E-6 : f32
    %28 = vector.broadcast %cst_19 : f32 to vector<8x1xf32>
    %29 = arith.addf %27, %28 : vector<8x1xf32>
    %30 = math.rsqrt %29 : vector<8x1xf32>
    %31 = vector.broadcast %30 : vector<8x1xf32> to vector<8x256xf32>
    %32 = arith.mulf %22, %31 : vector<8x256xf32>
    %33 = vector.extract_strided_slice %32 {offsets = [0, 0], sizes = [4, 256], strides = [1, 1]} : vector<8x256xf32> to vector<4x256xf32>
    %cst_20 = arith.constant 0.000000e+00 : f32
    %34 = vector.broadcast %cst_20 : f32 to vector<4x256xf32>
    %35 = arith.cmpf oge, %33, %34 : vector<4x256xf32>
    %cst_21 = arith.constant 2.000000e-01 : f32
    %36 = vector.broadcast %cst_21 : f32 to vector<4x256xf32>
    %37 = arith.mulf %36, %33 : vector<4x256xf32>
    %38 = arith.select %35, %33, %37 : vector<4x256xi1>, vector<4x256xf32>
    %39 = vector.extract_strided_slice %32 {offsets = [4, 0], sizes = [4, 256], strides = [1, 1]} : vector<8x256xf32> to vector<4x256xf32>
    %40 = arith.addf %39, %38 : vector<4x256xf32>
    %cst_22 = arith.constant 0.000000e+00 : f32
    %41 = vector.broadcast %cst_22 : f32 to vector<4x256xf32>
    %42 = arith.cmpf oge, %40, %41 : vector<4x256xf32>
    %cst_23 = arith.constant 2.000000e-01 : f32
    %43 = vector.broadcast %cst_23 : f32 to vector<4x256xf32>
    %44 = arith.mulf %43, %40 : vector<4x256xf32>
    %45 = arith.select %42, %40, %44 : vector<4x256xi1>, vector<4x256xf32>
    %c0_24 = arith.constant 0 : index
    %c0_25 = arith.constant 0 : index
    %c0_26 = arith.constant 0 : index
    %46 = vector.load %arg3[%c0_24, %c0_25, %c0_26] : memref<1x4x256xf32, #tpu.memory_space<vmem>>, vector<1x4x256xf32>
    %47 = vector.shape_cast %46 : vector<1x4x256xf32> to vector<4x256xf32>
    %48 = vector.shape_cast %45 : vector<4x256xf32> to vector<1x4x256xf32>
    tpu.vector_store %arg3[%c0_24, %c0_25, %c0_26], %48 {strides = array<i32>} : memref<1x4x256xf32, #tpu.memory_space<vmem>>, vector<1x4x256xf32>,
    return
  }
  func.func @transform_0(%arg0: i32) -> (i32, i32, i32) {
    %c0_i32 = arith.constant 0 : i32
    %c0_i32_0 = arith.constant 0 : i32
    %c0_i32_1 = arith.constant 0 : i32
    return %arg0, %c0_i32, %c0_i32_0 : i32, i32, i32
  }
  func.func @transform_1(%arg0: i32) -> (i32, i32, i32) {
    %c0_i32 = arith.constant 0 : i32
    %c0_i32_0 = arith.constant 0 : i32
    %c0_i32_1 = arith.constant 0 : i32
    %c0_i32_2 = arith.constant 0 : i32
    return %c0_i32, %c0_i32_0, %c0_i32_1 : i32, i32, i32
  }
  func.func @transform_2(%arg0: i32) -> (i32, i32, i32) {
    %c0_i32 = arith.constant 0 : i32
    %c0_i32_0 = arith.constant 0 : i32
    %c0_i32_1 = arith.constant 0 : i32
    return %arg0, %c0_i32, %c0_i32_0 : i32, i32, i32
  }
}

</mosaic_0001>

<bundles_post_ra>
// kernel: residual_block_forward.1
= control target key start
LH: loop header
LB: loop body
LE: loop exit
PB: predicated region body
PF: predicated region fallthrough
CT: control target
= control target key end

     0   :  { %s508_s9 = smov 0   ;;  %s547_s0 = inlined_call_operand.vmem [shape: bf16[2,12,288], index: 0, kind: input, shape index: {}]   ;;  %s548_s1 = inlined_call_operand.vmem [shape: bf16[3,8,12], index: 1, kind: input, shape index: {}]   ;;  %s549_s2 = inlined_call_operand.vmem [shape: f32[2,4,256], index: 2, kind: output, shape index: {}]  }
   0x1 LB: > { %s436_s10 = sadd.s32 4294967295, %s488_s9   ;;  %p440_p0 = scmp.ge.s32.totalorder %s488_s9, 1  ;;  %s488_s9 = sphi %s508_s9, %s12_s9  }
   0x2   : > { %p112_p1 = scmp.lt.s32.totalorder %s488_s9, 3 }
   0x4   : > { %p113_p2 = pnand %p440_p0, %p112_p1 }
   0x5   : > { %p134_p3 = scmp.lt.s32.totalorder (!%p113_p2), %s436_s10, 1  ;;  %v490_v0 = vmov (!%p113_p2), 0   ;;  %vm178_vm0 = vcmask (!%p113_p2), 1045504   ;;  %s491_s15 = smov (!%p113_p2), 112   ;;  %v145_v5 = vld [vmem:[%s548_s1] sm:$0xf] (!%p113_p2) }
   0x6   : > { %116 = sbr.rel (%p113_p2) target bundleno = 685 (0x2ad), region = 28  ;;  %267 = vmatprep.mubr.bf16.mxu0 (!%p113_p2), %v490_v0  ;;  %217 = vmatprep.mubr.bf16.mxu1 (!%p113_p2), %v490_v0  ;;  %vm174_vm1 = vcmask (!%p113_p2), 97280   ;;  %s492_s18 = smov (!%p113_p2), 96   ;;  %vm171_vm2 = vcmask (!%p113_p2), 916480   ;;  %vm284_vm3 = vcmask (!%p113_p2), 785408  }
   0x7   : > { %v444_v14 = vld [vmem:[%s548_s1 + $0x4] sm:$0xf] (!%p113_p2)  ;;  %v452_v19 = vld [vmem:[%s548_s1 + $0x8] sm:$0xf] (!%p113_p2) }
   0xd   : > { %s551_s10 = smov (!%p134_p3, %s436_s10), 1 }
   0xe   : > { %s464_s11 = smul.u32 24, %s551_s10  ;;  %s457_s23 = sshll.u32 %s551_s10, 3 }
   0xf   : > { %s143_s26 = scalar_lea.vmem %s549_s2, %s457_s23 }
  0x10   : > { %s138_s14 = scalar_lea.vmem %s547_s0, %s464_s11 }
  0x11   : > { %v476_v1 = vld [vmem:[%s138_s14 + $0x8] ss:$12 sps:$4 sm:$0x3f]   ;;  %v477_v2 = vld [vmem:[%s138_s14] ss:$12 sps:$4 sm:$0x3f]  }
  0x12   : > { %v479_v3 = vld [vmem:[%s138_s14 + $0x4] ss:$12 sps:$4 sm:$0x3f]   ;;  %169 = vrot.lane.b32.xlu1 %v476_v1, %s491_s15  ;;  %165 = vrot.lane.b32.xlu0 %v477_v2, %s491_s15  ;;  %v230_v4 = vsel %vm178_vm0, %v477_v2, 0 }
  0x13   : > { %450 = vmatprep.subr.msk.bf16.mxu0 %vm178_vm0, %v479_v3 }
  0x14   : > { %236 = vmatpush1.bf16.msra.mxu0 %v230_v4 }
  0x16   : > { %278 = vrot.lane.b32.xlu1 %v477_v2, %s492_s18  ;;  %167 = vrot.lane.b32.xlu0 %v479_v3, %s491_s15 }
  0x17   : > { %451 = vmatmul.mubr.msk.bf16.vlgmr.msra.gmra.mrb[0].mxu0 %vm174_vm1, %v145_v5 }
  0x18   : > { %328 = vmatprep.mubr.bf16.mxu0 %v490_v0 }
  0x1a   : > { %282 = vrot.lane.b32.xlu1 %v476_v1, %s492_s18  ;;  %280 = vrot.lane.b32.xlu0 %v479_v3, %s492_s18 }
  0x84   : > { %v170_v6 = vpop.permute.xlu1 %169  ;;  %v166_v7 = vpop.permute.xlu0 %165 }
  0x88   : > { %v279_v8 = vpop.permute.xlu1 %278  ;;  %v168_v9 = vpop.permute.xlu0 %167 }
  0x89   : > { %v173_v10 = vsel %vm171_vm2, %v168_v9, %v170_v6  ;;  %v172_v11 = vsel %vm171_vm2, %v166_v7, %v168_v9 }
  0x8a   : > { %448 = vmatprep.subr.msk.bf16.mxu1 %vm178_vm0, %v173_v10  ;;  %v180_v12 = vsel %vm178_vm0, %v172_v11, 0 }
  0x8b   : > { %186 = vmatpush1.bf16.msra.mxu1 %v180_v12 }
  0x8c   : > { %v283_v13 = vpop.permute.xlu1 %282  ;;  %v281_v15 = vpop.permute.xlu0 %280 }
  0x8d   : > { %v285_v16 = vsel %vm284_vm3, %v279_v8, %v281_v15  ;;  %v286_v17 = vsel %vm284_vm3, %v281_v15, %v283_v13 }
  0x8e   : > { %v291_v18 = vsel %vm178_vm0, %v285_v16, 0  ;;  %453 = vmatprep.subr.msk.bf16.mxu0 %vm178_vm0, %v286_v17  ;;  %449 = vmatmul.mubr.msk.bf16.vlgmr.msra.gmra.mrb[0].mxu1 %vm174_vm1, %v444_v14 }
  0x8f   : > { %297 = vmatpush1.bf16.msra.mxu0 %v291_v18 }
  0x92   : > { %454 = vmatmul.mubr.msk.bf16.vlgmr.msra.gmra.mrb[0].mxu0 %vm174_vm1, %v452_v19 }
 0x161   : > { %v219_v20 = vpop.f32.mrb[0].mxu1 }
 0x162   : > { %v221_v21 = vpop.f32.mrb[1].mxu1 }
 0x163   : > { %v223_v22 = vpop.f32.mrb[2].mxu1 }
 0x164   : > { %v224_v23 = vpop.f32.mrb[3].mxu1 }
 0x165   : > { %v330_v24 = vpop.f32.mrb[0].mxu0 }
 0x166   : > { %v458_v25 = vadd.f32 %v330_v24, %v219_v20  ;;  %v332_v26 = vpop.f32.mrb[1].mxu0 }
 0x167   : > { %v459_v27 = vadd.f32 %v332_v26, %v221_v21  ;;  %v334_v28 = vpop.f32.mrb[2].mxu0 }
 0x168   : > { %v335_v29 = vpop.f32.mrb[3].mxu0 }
 0x169   : > { %v339_v30 = vadd.f32 %v459_v27, %v458_v25 }
 0x16b   : > { %340 = vadd.xlane.f32.xlu0 %v339_v30 }
 0x1f8   : > { %v341_v31 = vpop.xlane.xlu0 %340 }
 0x1f9   : > { %v343_v32 = vmul.f32 0.00390625, %v341_v31 }
 0x1fb   : > { %v344_v33 = vsub.f32 %v458_v25, %v343_v32  ;;  %v345_v34 = vsub.f32 %v459_v27, %v343_v32 }
 0x1fd   : > { %v346_v35 = vmul.f32 %v344_v33, %v344_v33  ;;  %v347_v36 = vmul.f32 %v345_v34, %v345_v34 }
 0x1ff   : > { %v348_v37 = vadd.f32 %v347_v36, %v346_v35 }
 0x201   : > { %349 = vadd.xlane.f32.xlu1 %v348_v37 }
 0x28e   : > { %v350_v38 = vpop.xlane.xlu1 %349 }
 0x28f   : > { %v351_v39 = vmul.f32 0.00390625, %v350_v38 }
 0x291   : > { %v352_v40 = vadd.f32 1e-05, %v351_v39 }
 0x293   : > { %480 = vrsqrt.f32 %v352_v40 }
 0x29d   : > { %v481_v41 = vpop.eup %480 }
 0x29e   : > { %v354_v42 = vmul.f32 %v481_v41, %v344_v33  ;;  %v355_v43 = vmul.f32 %v481_v41, %v345_v34 }
 0x2a0   : > { %vm356_vm4 = vcmp.ge.f32.partialorder %v354_v42, 0.0  ;;  %vm357_vm5 = vcmp.ge.f32.partialorder %v355_v43, 0.0  ;;  %v358_v44 = vmul.f32 0.2, %v354_v42  ;;  %v359_v45 = vmul.f32 0.2, %v355_v43 }
 0x2a2   : > { %v360_v46 = vsel %vm356_vm4, %v354_v42, %v358_v44  ;;  %v361_v47 = vsel %vm357_vm5, %v355_v43, %v359_v45 }
 0x2a3   : > { %v364_v48 = vrot.slane %v360_v46, 4  ;;  %v365_v49 = vrot.slane %v361_v47, 4 }
 0x2a5   : > { %v368_v50 = vadd.f32 %v364_v48, %v354_v42  ;;  %v369_v51 = vadd.f32 %v365_v49, %v355_v43 }
 0x2a7   : > { %vm370_vm6 = vcmp.ge.f32.partialorder %v368_v50, 0.0  ;;  %vm371_vm7 = vcmp.ge.f32.partialorder %v369_v51, 0.0  ;;  %v372_v52 = vmul.f32 0.2, %v368_v50  ;;  %v373_v53 = vmul.f32 0.2, %v369_v51 }
 0x2a9   : > { %v374_v54 = vsel %vm370_vm6, %v368_v50, %v372_v52  ;;  %v375_v55 = vsel %vm371_vm7, %v369_v51, %v373_v53 }
 0x2aa   : > { %v378_v56 = vcombine.high %v374_v54, %v375_v55 }
 0x2ac   : > { %380 = vst [vmem:[%s143_s26] sm:$0xff] %v378_v56 }
 0x2ad PF: > { %s12_s9 = sadd.s32 1, %s488_s9  }
 0x2ae   : > { %p9_p4 = scmp.ge.s32.totalorder %s12_s9, 4  }
 0x2b0   :  { %11 = sbr.rel (!%p9_p4) target bundleno = 1 (0x1), region = 60 }

</bundles_post_ra>
